<compile_context>
chip_gen: v7x
topology: tpu7x:2x2x1
jax: 0.10.0
libtpu: 0.0.40
codegen_flags: <defaults>
</compile_context>

<pallas_src>
import jax
import jax.numpy as jnp
from jax import lax
from jax.experimental import pallas as pl
from jax.experimental.pallas import tpu as pltpu


def _band_add_kernel(sb_ref, x_ref, p_ref, o_ref):
    """Elementwise add on one band tile.

    sb_ref : SMEM (1,) int32      -- scalar-prefetched band row-block start (used only by
                                     the index_maps; unused in the body).
    x_ref  : VMEM (Bt, C, SUB, W) -- SUB-row slab of the images inside the patch band.
    p_ref  : VMEM (1,  C, SUB, W) -- matching slab of the placed patch (zero outside the
                                     P x P window), broadcast over the batch tile.
    o_ref  : VMEM (Bt, C, SUB, W) -- output slab; aliased onto the same HBM rows as x_ref.
    """
    del sb_ref
    o_ref[...] = x_ref[...] + p_ref[...]


def _vmem_capacity_bytes():
    try:
        return int(pltpu.get_tpu_info().vmem_capacity_bytes)
    except Exception:
        return 64 << 20  # conservative fallback (v7x per-TensorCore VMEM)


def _pick_batch_tile(B, C, W, sub, itemsize, n_h, block_budget_bytes):
    """Largest batch tile whose 4 double-buffered in+out blocks fit the VMEM budget,
    preferring an even total grid-step count (v7x has 2 TensorCores)."""
    bytes_per_b = C * sub * W * itemsize
    fits = [d for d in range(1, B + 1)
            if B % d == 0 and 4 * d * bytes_per_b <= block_budget_bytes]
    if not fits:
        fits = [1]
    bt = max(fits)
    if ((B // bt) * n_h) % 2 != 0:
        even = [d for d in fits
                if ((B // d) * n_h) % 2 == 0 and d * bytes_per_b >= (256 << 10)]
        if even:
            bt = max(even)  # balanced split across v7x's 2 TensorCores
    return bt


def random_patch_prompter_forward(x, random_patch, i, j):
    """x: (B, C, H, W); random_patch: (1, C, P, P); i, j: int32 scalars (traced OK).

    Adds `random_patch` over rows [i, i+P) and cols [j, j+P) of every batch element.
    The Pallas output aliases x's buffer (in-place semantics like the PyTorch `+=`):
    callers MUST donate x (e.g. jax.jit(..., donate_argnums=0)), otherwise XLA silently
    inserts a full-image copy and the band-only HBM saving is lost.  A donated x must
    not be reused afterwards.
    """
    B, C, H, W = x.shape
    P = random_patch.shape[-1]
    assert random_patch.shape == (1, C, P, P), "patch must be (1, C, P, P)"
    assert P <= H and P <= W, "prompt_size must fit inside the image"
    dtype = x.dtype
    itemsize = jnp.dtype(dtype).itemsize

    # Dtype-aware sublane granularity: 8 rows (f32), 16 (bf16), 32 (int8/fp8).
    sub = max(8, 32 // itemsize)
    assert H % sub == 0, f"image height must be a multiple of {sub} for dtype {dtype}"

    i = jnp.asarray(i, jnp.int32)
    j = jnp.asarray(j, jnp.int32)

    # sub-row-aligned band that always covers rows [i, i+P), regardless of i % sub.
    BH = min(H, pl.cdiv(P + sub - 1, sub) * sub)        # band height (static)
    n_h = BH // sub                                     # row blocks per band (static)
    band_start = jnp.minimum((i // sub) * sub, H - BH)  # dynamic, multiple of sub
    sb = jnp.reshape(band_start // sub, (1,)).astype(jnp.int32)

    # Tiny band canvas with the patch placed at its dynamic offset (no full-image canvas).
    band_patch = jnp.zeros((1, C, BH, W), dtype)
    band_patch = lax.dynamic_update_slice(
        band_patch, random_patch.astype(dtype),
        (jnp.int32(0), jnp.int32(0), i - band_start, j))

    vmem_cap = _vmem_capacity_bytes()
    block_budget = (vmem_cap * 3) // 8      # budget for the 4 double-buffered in/out blocks
    Bt = _pick_batch_tile(B, C, W, sub, itemsize, n_h, block_budget)
    block_bytes = Bt * C * sub * W * itemsize
    patch_block_bytes = C * sub * W * itemsize
    vmem_limit = int(min((vmem_cap * 3) // 4,
                         max(16 << 20,
                             4 * block_bytes + 2 * patch_block_bytes + (4 << 20))))

    # x / out: dynamic row-block index (sb + h) inside the band, batch block bb.
    x_spec = pl.BlockSpec((Bt, C, sub, W), lambda bb, h, sb_ref: (bb, 0, sb_ref[0] + h, 0))
    # placed patch: h-th row slab of the band, shared across all batch blocks.
    p_spec = pl.BlockSpec((1, C, sub, W), lambda bb, h, sb_ref: (0, 0, h, 0))

    grid_spec = pltpu.PrefetchScalarGridSpec(
        num_scalar_prefetch=1,
        grid=(B // Bt, n_h),
        in_specs=[x_spec, p_spec],
        out_specs=x_spec,
    )

    return pl.pallas_call(
        _band_add_kernel,
        out_shape=jax.ShapeDtypeStruct(x.shape, dtype),
        grid_spec=grid_spec,
        # Inputs are (sb, x, band_patch): alias x (input index 1) onto output 0 so all
        # pixels outside the band stay untouched in HBM.
        input_output_aliases={1: 0},
        compiler_params=pltpu.CompilerParams(
            # Every (bb, h) step writes a disjoint output block -> both axes parallel,
            # letting v7x shard across its two TensorCores even when B // Bt == 1.
            dimension_semantics=("parallel", "parallel"),
            vmem_limit_bytes=vmem_limit,
        ),
    )(sb, x, band_patch)


if __name__ == "__main__":
    # Module config (args.image_size, args.prompt_size), small shapes.
    image_size = 16
    prompt_size = 4
    B, C = 2, 3

    key = jax.random.PRNGKey(0)
    kx, kp, ki, kj = jax.random.split(key, 4)
    random_patch = jax.random.normal(kp, (1, C, prompt_size, prompt_size), dtype=jnp.float32)

    # PyTorch uses host `random` for the patch location; here deterministic jax.random,
    # passed as traced int32 scalars so new locations never trigger recompilation.
    hi = image_size - prompt_size
    i0 = jax.random.randint(ki, (), 0, hi + 1, dtype=jnp.int32)
    j0 = jax.random.randint(kj, (), 0, hi + 1, dtype=jnp.int32)

    # x is donated: matches the module's in-place `+=` (caller must not reuse x after).
    fwd = jax.jit(random_patch_prompter_forward, donate_argnums=0)

    # Exercise the drawn location plus both corners (band-clamp edge cases); one compile.
    offsets = [(int(i0), int(j0)), (0, 0), (hi, hi)]
    for ii, jj in offsets:
        x = jax.random.normal(kx, (B, C, image_size, image_size), dtype=jnp.float32)
        ref = x.at[:, :, ii:ii + prompt_size, jj:jj + prompt_size].add(random_patch)
        ref = jax.block_until_ready(ref)

        out = fwd(x, random_patch, jnp.int32(ii), jnp.int32(jj))
        out = jax.block_until_ready(out)

        assert out.shape == ref.shape and out.dtype == ref.dtype
        assert bool(jnp.allclose(out, ref, atol=1e-6, rtol=1e-6)), (ii, jj)

    print("KERNEL_OK")
</pallas_src>

<mosaic_0001>
module attributes {stable_mosaic.version = 11 : i64} {
  func.func @_band_add_kernel(%arg0: i32, %arg1: i32, %arg2: memref<1xi32, #tpu.memory_space<smem>>, %arg3: memref<2x3x8x16xf32, #tpu.memory_space<vmem>>, %arg4: memref<1x3x8x16xf32, #tpu.memory_space<vmem>>, %arg5: memref<2x3x8x16xf32, #tpu.memory_space<vmem>>) attributes {dimension_semantics = [#tpu.dimension_semantics<parallel>, #tpu.dimension_semantics<parallel>], iteration_bounds = array<i64: 1, 2>, scalar_prefetch = 1 : i64, scratch_operands = 0 : i64, tpu.core_type = #tpu.core_type<tc>, window_params = [{transform_indices = @transform_0, window_bounds = array<i64: 2, 3, 8, 16>}, {transform_indices = @transform_1, window_bounds = array<i64: 1, 3, 8, 16>}, {transform_indices = @transform_2, window_bounds = array<i64: 2, 3, 8, 16>}]} {
    %c0 = arith.constant 0 : index
    %c0_0 = arith.constant 0 : index
    %c0_1 = arith.constant 0 : index
    %c0_2 = arith.constant 0 : index
    %0 = vector.load %arg3[%c0, %c0_0, %c0_1, %c0_2] : memref<2x3x8x16xf32, #tpu.memory_space<vmem>>, vector<2x3x8x16xf32>
    %c0_3 = arith.constant 0 : index
    %c0_4 = arith.constant 0 : index
    %c0_5 = arith.constant 0 : index
    %c0_6 = arith.constant 0 : index
    %1 = vector.load %arg4[%c0_3, %c0_4, %c0_5, %c0_6] : memref<1x3x8x16xf32, #tpu.memory_space<vmem>>, vector<1x3x8x16xf32>
    %2 = vector.broadcast %1 : vector<1x3x8x16xf32> to vector<2x3x8x16xf32>
    %3 = arith.addf %0, %2 : vector<2x3x8x16xf32>
    %c0_7 = arith.constant 0 : index
    %c0_8 = arith.constant 0 : index
    %c0_9 = arith.constant 0 : index
    %c0_10 = arith.constant 0 : index
    %4 = vector.load %arg5[%c0_7, %c0_8, %c0_9, %c0_10] : memref<2x3x8x16xf32, #tpu.memory_space<vmem>>, vector<2x3x8x16xf32>
    tpu.vector_store %arg5[%c0_7, %c0_8, %c0_9, %c0_10], %3 {strides = array<i32>} : memref<2x3x8x16xf32, #tpu.memory_space<vmem>>, vector<2x3x8x16xf32>,
    return
  }
  func.func @transform_0(%arg0: i32, %arg1: i32, %arg2: memref<1xi32, #tpu.memory_space<smem>>) -> (i32, i32, i32, i32) {
    %c0 = arith.constant 0 : index
    %0 = memref.load %arg2[%c0] : memref<1xi32, #tpu.memory_space<smem>>
    %1 = arith.addi %0, %arg1 : i32
    %c0_i32 = arith.constant 0 : i32
    %c0_i32_0 = arith.constant 0 : i32
    %c0_i32_1 = arith.constant 0 : i32
    return %arg0, %c0_i32, %1, %c0_i32_0 : i32, i32, i32, i32
  }
  func.func @transform_1(%arg0: i32, %arg1: i32, %arg2: memref<1xi32, #tpu.memory_space<smem>>) -> (i32, i32, i32, i32) {
    %c0_i32 = arith.constant 0 : i32
    %c0_i32_0 = arith.constant 0 : i32
    %c0_i32_1 = arith.constant 0 : i32
    %c0_i32_2 = arith.constant 0 : i32
    return %c0_i32, %c0_i32_0, %arg1, %c0_i32_1 : i32, i32, i32, i32
  }
  func.func @transform_2(%arg0: i32, %arg1: i32, %arg2: memref<1xi32, #tpu.memory_space<smem>>) -> (i32, i32, i32, i32) {
    %c0 = arith.constant 0 : index
    %0 = memref.load %arg2[%c0] : memref<1xi32, #tpu.memory_space<smem>>
    %1 = arith.addi %0, %arg1 : i32
    %c0_i32 = arith.constant 0 : i32
    %c0_i32_0 = arith.constant 0 : i32
    %c0_i32_1 = arith.constant 0 : i32
    return %arg0, %c0_i32, %1, %c0_i32_0 : i32, i32, i32, i32
  }
}

</mosaic_0001>

<bundles_post_ra>
// kernel: random_patch_prompter_forward.1
= control target key start
LH: loop header
LB: loop body
LE: loop exit
PB: predicated region body
PF: predicated region fallthrough
CT: control target
= control target key end

     0   :  { %s946_s0 = inlined_call_operand.<no memory space> [shape: s32[1], index: 0, kind: input, shape index: {}]   ;;  %s947_s1 = inlined_call_operand.hbm [shape: f32[2,3,16,16], index: 1, kind: input, shape index: {}, may-alias: {1,3}]   ;;  %s948_s2 = inlined_call_operand.vmem [shape: f32[1,3,16,16], index: 2, kind: input, shape index: {}]   ;;  %s949_s3 = inlined_call_operand.hbm [shape: f32[2,3,16,16], index: 3, kind: output, shape index: {}, may-alias: {1,3}]  }
   0x1   :  { %8 = sst [smem:[#allocation3]] %s946_s0 }
   0x2   :  { %9 = vsyncpa [#allocation5], 0 }
   0x3   :  { %11 = vsyncpa [#allocation5 + $0x1], 0 }
   0x4   :  { %12 = vsyncpa [#allocation6], 0 }
   0x5   :  { %14 = vsyncpa [#allocation6 + $0x1], 0  ;;  %s706_s14 = smov 0   ;;  %s708_s15 = smov 0  }
   0x6   :  { %s710_s16 = smov 0   ;;  %s712_s17 = smov 0  }
   0x7   :  { %s714_s18 = smov 0   ;;  %s716_s19 = smov 0  }
   0x8   :  { %s718_s20 = smov 0   ;;  %s720_s21 = smov 0  }
   0x9   :  { %s722_s0 = smov 0   ;;  %s724_s22 = smov 0  }
   0xa   :  { %s726_s23 = smov 0  }
   0xb LB: > { %955 = sst [smem:[#allocation11_spill]] %s661_s21  ;;  %s405_s24 = sadd.s32 4294967295, %s673_s23   ;;  %s673_s23 = sphi %s726_s23, %s20_s23   ;;  %s669_s22 = sphi %s724_s22, %s980_s22   ;;  %s665_s0 = sphi %s722_s0, %s979_s0   ;;  %s661_s21 = sphi %s720_s21, %s970_s21   ;;  %s657_s20 = sphi %s718_s20, %s978_s20   ;;  %s653_s19 = sphi %s716_s19, %s977_s19   ;;  %s649_s18 = sphi %s714_s18, %s976_s18   ;;  %s645_s17 = sphi %s712_s17, %s975_s17   ;;  %s641_s16 = sphi %s710_s16, %s974_s16   ;;  %s637_s15 = sphi %s708_s15, %s973_s15   ;;  %s633_s14 = sphi %s706_s14, %s972_s14  }
   0xc   : > { %s406_s25 = sadd.s32 4294967294, %s673_s23   ;;  %s29_s26 = sadd.s32 1, %s669_s22 }
   0xd   : > { %s36_s27 = sld [smem:[#allocation3]]  ;;  %p30_p0 = scmp.ge.s32.totalorder %s29_s26, 2 }
   0xe   : > { %s45_s28 = sadd.s32 1, %s661_s21  ;;  %p52_p1 = scmp.ne.s32.totalorder %s661_s21, %s657_s20 }
   0xf   : > { %p53_p2 = scmp.eq.s32.totalorder %s673_s23, 0  ;;  %s982_s26 = smov (%p30_p0, %s29_s26), 0 }
  0x10   : > { %956 = sst [smem:[#allocation12_spill]] %s982_s26  ;;  %p58_p4 = scmp.ne.s32.totalorder %s657_s20, %s653_s19 }
  0x11   : > { %p770_p3 = por %p53_p2, %p52_p1  ;;  %p59_p5 = scmp.eq.s32.totalorder %s405_s24, 0 }
  0x12   : > { %s68_s30 = ssub.s32 %s669_s22, %s982_s26  ;;  %s71_s8 = sadd.s32 1, %s649_s18 }
  0x13   : > { %s37_s4 = sadd.s32 %s669_s22, %s36_s27  ;;  %s39_s5 = sadd.s32 %s36_s27, %s982_s26 }
  0x14   : > { %s41_s6 = ssub.s32 %s37_s4, %s39_s5  ;;  %p779_p6 = por %p59_p5, %p58_p4 }
  0x15   : > { %p43_p7 = scmp.eq.s32.totalorder %s41_s6, 0  ;;  %p69_p8 = scmp.eq.s32.totalorder %s68_s30, 0 }
  0x16   : > { %s958_s7 = scalar_select %p779_p6, 1, 0 }
  0x17   : > { %p78_p9 = scmp.ne.s32.totalorder %s649_s18, %s645_s17  ;;  %s103_s12 = sadd.s32 1, %s641_s16 }
  0x18   : > { %s787_s9 = scalar_select %p43_p7, %s661_s21, %s45_s28  }
  0x19   : > { %s790_s10 = scalar_select %p69_p8, %s649_s18, %s71_s8  }
  0x1a   : > { %959 = sst [smem:[#allocation13_spill]] %s787_s9  ;;  %p794_p10 = por %p78_p9, %p53_p2 }
  0x1b   : > { %960 = sst [smem:[#allocation14_spill]] %s790_s10  ;;  %p113_p11 = scmp.ne.s32.totalorder %s641_s16, %s637_s15 }
  0x1c   : > { %s800_s13 = scalar_select %p43_p7, %s641_s16, %s103_s12  }
  0x1d   : > { %p114_p12 = scmp.eq.s32.totalorder %s405_s24, 1  ;;  %p119_p13 = scmp.ne.s32.totalorder %s637_s15, %s633_s14 }
  0x1e   : > { %p120_p0 = scmp.eq.s32.totalorder %s406_s25, 1  ;;  %p952_p2 = scmp.ge.s32.totalorder %s673_s23, 2 }
  0x1f   : > { %p806_p1 = por %p114_p12, %p113_p11  ;;  %s140_s28 = sand.u32 (!%p952_p2), 1, %s661_s21  }
  0x20   : > { %p810_p4 = por %p120_p0, %p119_p13  ;;  %136 = sbr.rel (%p952_p2) target bundleno = 73 (0x49), region = 16 }
  0x21   : > { %s962_s19 = scalar_select %p806_p1, 1, 0 }
  0x22   : > { %s963_s27 = scalar_select %p810_p4, 1, 0 }
  0x23   : > { %s145_s24 = sld [smem:[#allocation3]] (!%p952_p2)  ;;  %s415_s30 = smul.u32 (!%p952_p2), 48, %s140_s28 }
  0x24   : > { %s826_s9 = scalar_lea.sflag (!%p952_p2), [#allocation5], %s140_s28 }
  0x25   : > { %s144_s25 = scalar_lea.vmem (!%p952_p2), [#allocation4], %s415_s30 }
  0x26   : > { %s155_s4 = sshll.u32 (!%p952_p2), %s144_s25, 4  ;;  %s527_s25 = scalar_lea.hbm (!%p952_p2), %s947_s1, 1536  ;;  %s819_s4 = int_to_ptr.vmem [resolvable:$true] %s155_s4 }
  0x29   : > { %s146_s5 = sadd.s32 %s669_s22, %s145_s24 }
  0x2a   : > { %s409_s6 = sshll.u32 %s146_s5, 7 }
  0x2b   : > { %s824_s26 = scalar_lea.hbm %s947_s1, %s409_s6 }
  0x2c   : > { %s523_s21 = scalar_lea.hbm %s824_s26, 768  ;;  %p528_p9 = scmp.lt.u32.totalorder %s824_s26, %s947_s1 }
  0x2d   : > { %p524_p5 = scmp.ne.s32.totalorder %s824_s26, %s523_s21  ;;  %p529_p11 = scmp.lt.u32.totalorder %s527_s25, %s523_s21 }
  0x2e   : > { %p531_p13 = scmp.lt.u32.totalorder %s523_s21, %s824_s26 }
  0x2f   : > { %p525_p7 = pnand %p524_p5, %p770_p3  ;;  %p530_p12 = por %p529_p11, %p528_p9 }
  0x31   : > { %p526_p8 = pneg %p525_p7  ;;  %p532_p0 = por %p531_p13, %p530_p12 }
  0x33   : > { %p533_p2 = pnand %p532_p0, %p526_p8 }
  0x35   : > { %536 = shalt.err (!%p533_p2)
}
  0x36   : > { %s537_s28 = scalar_lea.vmem %s819_s4, 768  ;;  %s675_s6 = smov [#allocation4]  }
  0x37   : > { %p538_p5 = scmp.ne.s32.totalorder %s819_s4, %s537_s28  ;;  %s541_s8 = sshll.u32 %s675_s6, 4  ;;  %s542_s8 = int_to_ptr.vmem [resolvable:$false] %s541_s8 }
  0x38   : > { %s543_s10 = scalar_lea.vmem %s542_s8, 1536  ;;  %p544_p1 = scmp.lt.s32.totalorder %s819_s4, %s542_s8 }
  0x39   : > { %p539_p7 = pnand %p538_p5, %p770_p3  ;;  %p545_p6 = scmp.lt.s32.totalorder %s543_s10, %s537_s28 }
  0x3b   : > { %p540_p4 = pneg %p539_p7  ;;  %p546_p9 = por %p545_p6, %p544_p1 }
  0x3d   : > { %p547_p11 = pnand %p546_p9, %p540_p4 }
  0x3f   : > { %550 = shalt.err (!%p547_p11)
}
  0x40   : > { %s676_s21 = smov 256   ;;  %s677_s12 = smov 128  }
  0x41   : > { %s678_s24 = smov 8   ;;  %164 = sbr.rel (!%p794_p10) target bundleno = 73 (0x49), region = 24 }
  0x42   : > { %420 = dma.hbm_to_vmem [thread:$0]  (%p770_p3), %s824_s26, 768, %s819_s4, %s826_s9, %s676_s21, %s677_s12, %s678_s24  }
  0x43   : > { %s166_s30 = sand.u32 (%p794_p10), 1, %s649_s18   ;;  %s410_s25 = sshll.u32 (%p794_p10), %s669_s22, 3 }
  0x44   : > { %s416_s5 = smul.u32 (%p794_p10), 24, %s166_s30  ;;  %s170_s8 = scalar_lea.vmem (%p794_p10), %s948_s2, %s410_s25 }
  0x45   : > { %v202_v0 = vld [vmem:[%s170_s8] sm:$0xff] (%p794_p10)  ;;  %v204_v1 = vld [vmem:[%s170_s8 + $0x10] sm:$0xff] (%p794_p10) }
  0x46   : > { %v206_v2 = vld [vmem:[%s170_s8 + $0x20] sm:$0xff] (%p794_p10)  ;;  %s168_s10 = scalar_lea.vmem (%p794_p10), [#allocation7], %s416_s5 }
  0x47   : > { %203 = vst [vmem:[%s168_s10] sm:$0xff] (%p794_p10), %v202_v0  ;;  %205 = vst [vmem:[%s168_s10 + $0x8] sm:$0xff] (%p794_p10), %v204_v1 }
  0x48   : > { %207 = vst [vmem:[%s168_s10 + $0x10] sm:$0xff] %v206_v2 }
  0x49 PF: > { %p411_p3 = scmp.ge.s32.totalorder %s673_s23, 1  ;;  %p212_p6 = scmp.lt.s32.totalorder %s673_s23, 3 }
  0x4b   : > { %p213_p10 = pnand %p411_p3, %p212_p6 }
  0x4c   : > { %s218_s26 = sand.u32 (!%p213_p10), 1, %s657_s20   ;;  %p964_p1 = scmp.ne.s32.totalorder (!%p213_p10), %s958_s7, 0 }
  0x4d   : > { %216 = sbr.rel (%p213_p10) target bundleno = 116 (0x74), region = 62  ;;  %s219_s9 = scalar_lea.sflag (!%p213_p10), [#allocation5], %s218_s26 }
  0x4e   : > { %s417_s29 = smul.u32 (!%p213_p10), 48, %s218_s26 }
  0x50   : > { %s222_s11 = scalar_lea.vmem (!%p213_p10), [#allocation4], %s417_s29 }
  0x54   : > { %624 = dma.done.wait (%p964_p1), %s219_s9, 768  }
  0x55   : > { %626 = vsyncadd (%p964_p1), %s219_s9, 4294966528  ;;  %s228_s4 = sand.u32 1, %s645_s17   ;;  %s251_s21 = sand.u32 1, %s637_s15   ;;  %v260_v3 = vld [vmem:[%s222_s11] sm:$0xff]  ;;  %vm275_vm0 = vcmask 130048   ;;  %v261_v5 = vld [vmem:[%s222_s11 + $0x8] sm:$0xff] }
  0x56   : > { %s418_s12 = smul.u32 24, %s228_s4  ;;  %s290_s30 = sld [smem:[#allocation3]]  ;;  %v262_v8 = vld [vmem:[%s222_s11 + $0x10] sm:$0xff]  ;;  %v263_v12 = vld [vmem:[%s222_s11 + $0x18] sm:$0xff]  ;;  %v264_v13 = vld [vmem:[%s222_s11 + $0x20] sm:$0xff] }
  0x57   : > { %s419_s24 = smul.u32 48, %s251_s21  ;;  %v265_v14 = vld [vmem:[%s222_s11 + $0x28] sm:$0xff]  ;;  %s884_s10 = scalar_lea.sflag [#allocation6], %s251_s21 }
  0x58   : > { %s230_s25 = scalar_lea.vmem [#allocation7], %s418_s12  ;;  %p965_p2 = scmp.ne.s32.totalorder %s962_s19, 0 }
  0x59   : > { %v266_v4 = vld [vmem:[%s230_s25] sm:$0xff]  ;;  %s253_s5 = scalar_lea.vmem [#allocation8], %s419_s24  ;;  %v267_v7 = vld [vmem:[%s230_s25 + $0x8] sm:$0xff]  ;;  %v268_v9 = vld [vmem:[%s230_s25 + $0x10] sm:$0xff]  ;;  %s679_s29 = smov [#allocation8]  }
  0x5a   : > { %s300_s28 = sshll.u32 %s253_s5, 4  ;;  %v269_v6 = vadd.f32 %v266_v4, %v260_v3  ;;  %v270_v10 = vadd.f32 %v267_v7, %v261_v5  ;;  %v271_v11 = vadd.f32 %v268_v9, %v262_v8  ;;  %v272_v15 = vadd.f32 %v266_v4, %v263_v12  ;;  %s555_s9 = sshll.u32 %s679_s29, 4  ;;  %s870_s28 = int_to_ptr.vmem [resolvable:$true] %s300_s28  ;;  %s556_s9 = int_to_ptr.vmem [resolvable:$false] %s555_s9 }
  0x5b   : > { %v273_v16 = vadd.f32 %v267_v7, %v264_v13  ;;  %v274_v17 = vadd.f32 %v268_v9, %v265_v14  ;;  %s551_s26 = scalar_lea.vmem %s870_s28, 768  ;;  %s557_s11 = scalar_lea.vmem %s556_s9, 1536 }
  0x5c   : > { %s291_s7 = sadd.s32 %s665_s0, %s290_s30  ;;  %276 = vst.msk [vmem:[%s253_s5] sm:$0xff] %vm275_vm0, %v269_v6  ;;  %277 = vst.msk [vmem:[%s253_s5 + $0x8] sm:$0xff] %vm275_vm0, %v270_v10  ;;  %p552_p4 = scmp.ne.s32.totalorder %s870_s28, %s551_s26 }
  0x5d   : > { %s412_s17 = sshll.u32 %s291_s7, 7  ;;  %278 = vst.msk [vmem:[%s253_s5 + $0x10] sm:$0xff] %vm275_vm0, %v271_v11  ;;  %279 = vst.msk [vmem:[%s253_s5 + $0x18] sm:$0xff] %vm275_vm0, %v272_v15  ;;  %p558_p13 = scmp.lt.s32.totalorder %s870_s28, %s556_s9 }
  0x5e   : > { %s875_s0 = scalar_lea.hbm %s949_s3, %s412_s17  ;;  %280 = vst.msk [vmem:[%s253_s5 + $0x20] sm:$0xff] %vm275_vm0, %v273_v16  ;;  %281 = vst.msk [vmem:[%s253_s5 + $0x28] sm:$0xff] %vm275_vm0, %v274_v17  ;;  %p553_p8 = pnand %p552_p4, %p965_p2 }
  0x5f   : > { %p559_p0 = scmp.lt.s32.totalorder %s557_s11, %s551_s26 }
  0x60   : > { %p554_p12 = pneg %p553_p8 }
  0x61   : > { %p560_p5 = por %p559_p0, %p558_p13 }
  0x63   : > { %p561_p7 = pnand %p560_p5, %p554_p12 }
  0x65   : > { %564 = shalt.err (!%p561_p7)
}
  0x66   : > { %s565_s4 = scalar_lea.hbm %s875_s0, 768  ;;  %s569_s24 = scalar_lea.hbm %s949_s3, 1536 }
  0x67   : > { %p566_p9 = scmp.ne.s32.totalorder %s875_s0, %s565_s4  ;;  %p570_p6 = scmp.lt.u32.totalorder %s875_s0, %s949_s3 }
  0x68   : > { %p571_p10 = scmp.lt.u32.totalorder %s569_s24, %s565_s4  ;;  %p573_p4 = scmp.lt.u32.totalorder %s565_s4, %s875_s0 }
  0x69   : > { %p567_p11 = pnand %p566_p9, %p965_p2 }
  0x6a   : > { %p572_p1 = por %p571_p10, %p570_p6 }
  0x6b   : > { %p568_p3 = pneg %p567_p11 }
  0x6c   : > { %p574_p8 = por %p573_p4, %p572_p1 }
  0x6e   : > { %p575_p12 = pnand %p574_p8, %p568_p3 }
  0x70   : > { %578 = shalt.err (!%p575_p12)
}
  0x71   : > { %s680_s5 = smov 128   ;;  %s681_s7 = smov 256  }
  0x72   : > { %s682_s17 = smov 8  }
  0x73   : > { %422 = dma.vmem_to_hbm [thread:$0]  (%p965_p2), %s870_s28, 768, %s875_s0, %s884_s10, %s680_s5, %s681_s7, %s682_s17  }
  0x74 PF: > { %s315_s6 = sand.u32 1, %s633_s14   ;;  %p966_p13 = scmp.ne.s32.totalorder %s963_s27, 0 }
  0x75   : > { %p967_p0 = scmp.ge.s32.totalorder %s673_s23, 2  ;;  %s316_s8 = scalar_lea.sflag [#allocation6], %s315_s6 }
  0x77   : > { %p425_p5 = pnand %p967_p0, %p966_p13 }
  0x79   : > { %628 = dma.done.wait (!%p425_p5), %s316_s8, 768  }
  0x7a   : > { %630 = vsyncadd (!%p425_p5), %s316_s8, 4294966528  ;;  %s20_s23 = sadd.s32 1, %s673_s23   ;;  %s968_s19 = sld [smem:[#allocation14_spill]] }
  0x7b   : > { %p17_p7 = scmp.ge.s32.totalorder %s20_s23, 4   ;;  %s969_s28 = sld [smem:[#allocation11_spill]] }
  0x7c   : > { %s970_s21 = sld [smem:[#allocation13_spill]]  ;;  %s971_s10 = sld [smem:[#allocation12_spill]] }
  0x7d   : > { %s972_s14 = smov %s637_s15  ;;  %s973_s15 = smov %s641_s16 }
  0x7e   : > { %s974_s16 = smov %s800_s13  ;;  %s975_s17 = smov %s649_s18 }
  0x7f   : > { %s979_s0 = smov %s669_s22  ;;  %19 = sbr.rel (!%p17_p7) target bundleno = 11 (0xb), region = 119 }
  0x80   : > { %s976_s18 = smov %s968_s19  ;;  %s977_s19 = smov %s657_s20 }
  0x81   : > { %s978_s20 = smov %s969_s28 }
  0x82   : > { %s980_s22 = smov %s971_s10 }
  0x86   :  { %321 = vsyncpa [#allocation5], 1 }
  0x87   :  { %323 = vsyncpa [#allocation5 + $0x1], 1 }
  0x88   :  { %324 = vsyncpa [#allocation6], 1 }
  0x89   :  { %326 = vsyncpa [#allocation6 + $0x1], 1 }

</bundles_post_ra>
